<compile_context>
chip_gen: v6e
topology: v6e:2x2x1
jax: 0.10.0
libtpu: 0.0.40
codegen_flags: <defaults>
</compile_context>

<pallas_src>
import jax
import jax.numpy as jnp
from jax.experimental import pallas as pl
from jax.experimental.pallas import tpu as pltpu

B, L = 2, 8
C_IN, C_HID, C_OUT = 32, 64, 32
P_DROP = 0.25

LANE = 128        # lane-dense padded channel width
ROW_TILE = 128    # rows per grid step (multiple of 8 sublanes)

_DOT_PREC = jax.lax.Precision.HIGHEST  # full-f32 MXU passes; keeps kernel ~= jnp reference
# TODO(synk): for large batched inputs on v6e/v7x, cast x/w to bf16 (f32 accumulation)
# — skipped here because the example is overhead-bound, not MXU-bound.


def _mlp_dropout_kernel(x_ref, w1_ref, b1_ref, w2_ref, b2_ref, keep_ref, o_ref):
    # x_ref / keep_ref / o_ref: (ROW_TILE, LANE); weights (LANE, LANE); biases (1, LANE).
    h = jnp.dot(x_ref[...], w1_ref[...],
                preferred_element_type=jnp.float32, precision=_DOT_PREC)
    # Dropout2dChannelsLast: per-(batch, channel) keep mask, pre-scaled by 1/(1-p),
    # already expanded to one row per (b, l) -> a single lane-aligned VPU multiply.
    h = (h + b1_ref[...]) * keep_ref[...]
    out = jnp.dot(h, w2_ref[...],
                  preferred_element_type=jnp.float32, precision=_DOT_PREC)
    o_ref[...] = (out + b2_ref[...]).astype(o_ref.dtype)


def _affine_kernel(x_ref, w_ref, b_ref, o_ref):
    # Eval path: the whole module collapses to a single affine map.
    out = jnp.dot(x_ref[...], w_ref[...],
                  preferred_element_type=jnp.float32, precision=_DOT_PREC)
    o_ref[...] = (out + b_ref[...]).astype(o_ref.dtype)


def _pad2(a, rows, cols):
    a = jnp.asarray(a, jnp.float32)
    return jnp.pad(a, ((0, rows - a.shape[0]), (0, cols - a.shape[1])))


def _dropout_keep_mask(seed, batch, channels, p):
    """One Bernoulli(1-p) draw per (batch, channel), pre-scaled by 1/(1-p).

    Matches F.dropout applied to a (B, 1, C) ones tensor (Dropout2dChannelsLast):
    whole channels are dropped, shared across the length axis.
    """
    key = jax.random.PRNGKey(seed)
    keep = jax.random.bernoulli(key, 1.0 - p, (batch, channels))
    return keep.astype(jnp.float32) * (1.0 / (1.0 - p))


def masked_sequential(x, mask, params, *, seed=0, training=False):
    """Forward pass of the MaskedSequential instance. x: (B, L, C_IN), mask: (B, L)."""
    del mask  # accepted to mirror forward(x, mask); no sub-module consumes it
    w1, b1, w2, b2 = params
    bsz, slen, c_in = x.shape
    c_hid, c_out = w1.shape[1], w2.shape[1]

    rows = bsz * slen
    rows_p = pl.cdiv(rows, ROW_TILE) * ROW_TILE
    grid = (rows_p // ROW_TILE,)

    x2 = _pad2(x.reshape(rows, c_in), rows_p, LANE)

    row_spec = pl.BlockSpec((ROW_TILE, LANE), lambda i: (i, 0))
    mat_spec = pl.BlockSpec((LANE, LANE), lambda i: (0, 0))
    vec_spec = pl.BlockSpec((1, LANE), lambda i: (0, 0))
    out_shape = jax.ShapeDtypeStruct((rows_p, LANE), jnp.float32)
    cparams = pltpu.CompilerParams(dimension_semantics=("parallel",))

    if training and P_DROP > 0.0:
        w1p = _pad2(w1, LANE, LANE)
        b1p = _pad2(b1.reshape(1, -1), 1, LANE)
        w2p = _pad2(w2, LANE, LANE)
        b2p = _pad2(b2.reshape(1, -1), 1, LANE)
        keep = _dropout_keep_mask(seed, bsz, c_hid, P_DROP)        # (B, C_HID)
        keep_rows = _pad2(jnp.repeat(keep, slen, axis=0), rows_p, LANE)

        cost = pl.CostEstimate(
            flops=2 * 2 * rows_p * LANE * LANE,
            transcendentals=0,
            bytes_accessed=4 * (3 * rows_p * LANE + 2 * LANE * LANE + 2 * LANE),
        )
        out_p = pl.pallas_call(
            _mlp_dropout_kernel,
            out_shape=out_shape,
            grid=grid,
            in_specs=[row_spec, mat_spec, vec_spec, mat_spec, vec_spec, row_spec],
            out_specs=row_spec,
            compiler_params=cparams,
            cost_estimate=cost,
        )(x2, w1p, b1p, w2p, b2p, keep_rows)
    else:
        # Eval: dropout is identity -> fold the two linears into one affine map.
        w_eff = jnp.dot(w1, w2, precision=_DOT_PREC)
        b_eff = jnp.dot(b1.reshape(1, -1), w2, precision=_DOT_PREC) + b2.reshape(1, -1)
        w_eff_p = _pad2(w_eff, LANE, LANE)
        b_eff_p = _pad2(b_eff, 1, LANE)

        cost = pl.CostEstimate(
            flops=2 * rows_p * LANE * LANE,
            transcendentals=0,
            bytes_accessed=4 * (2 * rows_p * LANE + LANE * LANE + LANE),
        )
        out_p = pl.pallas_call(
            _affine_kernel,
            out_shape=out_shape,
            grid=grid,
            in_specs=[row_spec, mat_spec, vec_spec],
            out_specs=row_spec,
            compiler_params=cparams,
            cost_estimate=cost,
        )(x2, w_eff_p, b_eff_p)

    return out_p[:rows, :c_out].reshape(bsz, slen, c_out)


if __name__ == "__main__":
    key = jax.random.PRNGKey(0)
    kx, km, k1, k2, k3, k4 = jax.random.split(key, 6)

    x = jax.random.normal(kx, (B, L, C_IN), dtype=jnp.float32)
    # validity mask over sequence positions (B, L) — threaded through like forward(x, mask)
    mask = (jax.random.uniform(km, (B, L)) > 0.2).astype(jnp.float32)

    # deterministic parameter init (PyTorch nn.Linear default: U(-1/sqrt(fan_in), 1/sqrt(fan_in)))
    bnd1 = 1.0 / (C_IN ** 0.5)
    w1 = jax.random.uniform(k1, (C_IN, C_HID), minval=-bnd1, maxval=bnd1, dtype=jnp.float32)
    b1 = jax.random.uniform(k2, (C_HID,), minval=-bnd1, maxval=bnd1, dtype=jnp.float32)
    bnd2 = 1.0 / (C_HID ** 0.5)
    w2 = jax.random.uniform(k3, (C_HID, C_OUT), minval=-bnd2, maxval=bnd2, dtype=jnp.float32)
    b2 = jax.random.uniform(k4, (C_OUT,), minval=-bnd2, maxval=bnd2, dtype=jnp.float32)
    params = (w1, b1, w2, b2)

    hi = jax.lax.Precision.HIGHEST

    # eval mode: dropout is identity -> folded kernel must match pure-JAX reference
    out_eval = jax.block_until_ready(masked_sequential(x, mask, params, training=False))
    ref_eval = jnp.dot(jnp.dot(x, w1, precision=hi) + b1, w2, precision=hi) + b2
    assert out_eval.shape == (B, L, C_OUT)
    assert jnp.allclose(out_eval, ref_eval, atol=1e-4, rtol=1e-4), "eval-mode mismatch vs reference"

    # training mode: channel dropout with a seed-deterministic mask; compare against
    # a pure-JAX reference built with the identical keep mask.
    out_tr1 = jax.block_until_ready(masked_sequential(x, mask, params, seed=0, training=True))
    out_tr2 = jax.block_until_ready(masked_sequential(x, mask, params, seed=0, training=True))
    keep = _dropout_keep_mask(0, B, C_HID, P_DROP)                  # (B, C_HID)
    h_ref = (jnp.dot(x, w1, precision=hi) + b1) * keep[:, None, :]
    ref_tr = jnp.dot(h_ref, w2, precision=hi) + b2
    assert out_tr1.shape == (B, L, C_OUT)
    assert bool(jnp.all(jnp.isfinite(out_tr1)))
    assert jnp.allclose(out_tr1, ref_tr, atol=1e-4, rtol=1e-4), "training-mode mismatch vs reference"
    assert jnp.array_equal(out_tr1, out_tr2), "dropout not deterministic for fixed seed"

    print("KERNEL_OK")
</pallas_src>

<mosaic_0001>
module attributes {stable_mosaic.version = 11 : i64} {
  func.func @_affine_kernel(%arg0: i32, %arg1: memref<128x128xf32, #tpu.memory_space<vmem>>, %arg2: memref<128x128xf32, #tpu.memory_space<vmem>>, %arg3: memref<1x128xf32, #tpu.memory_space<vmem>>, %arg4: memref<128x128xf32, #tpu.memory_space<vmem>>) attributes {dimension_semantics = [#tpu.dimension_semantics<parallel>], iteration_bounds = array<i64: 1>, scalar_prefetch = 0 : i64, scratch_operands = 0 : i64, tpu.core_type = #tpu.core_type<tc>, window_params = [{transform_indices = @transform_0, window_bounds = array<i64: 128, 128>}, {pipeline_mode = #tpu.pipeline_mode<synchronous>, transform_indices = @transform_1, window_bounds = array<i64: 128, 128>}, {pipeline_mode = #tpu.pipeline_mode<synchronous>, transform_indices = @transform_2, window_bounds = array<i64: 1, 128>}, {transform_indices = @transform_3, window_bounds = array<i64: 128, 128>}]} {
    %c0 = arith.constant 0 : index
    %c0_0 = arith.constant 0 : index
    %0 = vector.load %arg1[%c0, %c0_0] : memref<128x128xf32, #tpu.memory_space<vmem>>, vector<128x128xf32>
    %c0_1 = arith.constant 0 : index
    %c0_2 = arith.constant 0 : index
    %1 = vector.load %arg2[%c0_1, %c0_2] : memref<128x128xf32, #tpu.memory_space<vmem>>, vector<128x128xf32>
    %cst = arith.constant dense<0.000000e+00> : vector<128x128xf32>
    %2 = tpu.matmul %0, %1, %cst {dimension_numbers = #tpu.dot_dimension_numbers<[1], [0], [0], [1], [0, 0, 1, 1], [], []>, precision = #tpu.contract_precision<fp32>} : vector<128x128xf32>, vector<128x128xf32>, vector<128x128xf32> -> vector<128x128xf32>
    %c0_3 = arith.constant 0 : index
    %c0_4 = arith.constant 0 : index
    %3 = vector.load %arg3[%c0_3, %c0_4] : memref<1x128xf32, #tpu.memory_space<vmem>>, vector<1x128xf32>
    %4 = vector.broadcast %3 : vector<1x128xf32> to vector<128x128xf32>
    %5 = arith.addf %2, %4 : vector<128x128xf32>
    %c0_5 = arith.constant 0 : index
    %c0_6 = arith.constant 0 : index
    %6 = vector.load %arg4[%c0_5, %c0_6] : memref<128x128xf32, #tpu.memory_space<vmem>>, vector<128x128xf32>
    tpu.vector_store %arg4[%c0_5, %c0_6], %5 {strides = array<i32>} : memref<128x128xf32, #tpu.memory_space<vmem>>, vector<128x128xf32>,
    return
  }
  func.func @transform_0(%arg0: i32) -> (i32, i32) {
    %c0_i32 = arith.constant 0 : i32
    %c0_i32_0 = arith.constant 0 : i32
    return %arg0, %c0_i32 : i32, i32
  }
  func.func @transform_1(%arg0: i32) -> (i32, i32) {
    %c0_i32 = arith.constant 0 : i32
    %c0_i32_0 = arith.constant 0 : i32
    %c0_i32_1 = arith.constant 0 : i32
    return %c0_i32, %c0_i32_0 : i32, i32
  }
  func.func @transform_2(%arg0: i32) -> (i32, i32) {
    %c0_i32 = arith.constant 0 : i32
    %c0_i32_0 = arith.constant 0 : i32
    %c0_i32_1 = arith.constant 0 : i32
    return %c0_i32, %c0_i32_0 : i32, i32
  }
  func.func @transform_3(%arg0: i32) -> (i32, i32) {
    %c0_i32 = arith.constant 0 : i32
    %c0_i32_0 = arith.constant 0 : i32
    return %arg0, %c0_i32 : i32, i32
  }
}

</mosaic_0001>

<bundles_post_ra>
// kernel: tpu_custom_call.1
= control target key start
LH: loop header
LB: loop body
LE: loop exit
PB: predicated region body
PF: predicated region fallthrough
CT: control target
= control target key end

     0   :  { %8 = vsyncpa [#allocation3], 0  ;;  %s2779_s0 = inlined_call_operand.hbm [shape: f32[128,128], index: 0, kind: input, shape index: {}]   ;;  %s2780_s1 = inlined_call_operand.hbm [shape: f32[128,128], index: 1, kind: input, shape index: {}]   ;;  %s2781_s2 = inlined_call_operand.vmem [shape: f32[1,128], index: 2, kind: input, shape index: {}]   ;;  %s2782_s3 = inlined_call_operand.hbm [shape: f32[128,128], index: 3, kind: output, shape index: {}]  }
   0x1   :  { %9 = vsyncpa [#allocation6], 0 }
   0x2   :  { %10 = vsyncpa [#allocation4], 0  ;;  %s2002_s12 = smov [#allocation2]  }
   0x3   :  { %s16_s13 = sshll.u32 %s2002_s12, 4  ;;  %s17_s13 = int_to_ptr.vmem [resolvable:$true] %s16_s13 }
   0x4   :  { %s1944_s14 = scalar_lea.vmem %s17_s13, 2048  ;;  %p1949_p1 = scmp.lt.s32.totalorder %s17_s13, %s17_s13 }
   0x5   :  { %p1945_p0 = scmp.ne.s32.totalorder %s17_s13, %s1944_s14  ;;  %p1950_p2 = scmp.lt.s32.totalorder %s1944_s14, %s1944_s14 }
   0x7   :  { %p1951_p3 = por %p1950_p2, %p1949_p1 }
   0x9   :  { %p1952_p4 = pnand %p1951_p3, %p1945_p0 }
   0xb   :  { %1955 = shalt.err (!%p1952_p4)
}
   0xc   :  { %s2003_s15 = smov 128   ;;  %s2004_s16 = smov 8  }
   0xd   :  { %22 = dma.hbm_to_vmem [thread:$0]  %s2779_s0, 2048, %s17_s13, [#allocation3], %s2003_s15, %s2003_s15, %s2004_s16  }
   0xe   :  { %s2005_s19 = smov [#allocation5]  }
   0xf   :  { %s28_s20 = sshll.u32 %s2005_s19, 4  ;;  %s29_s20 = int_to_ptr.vmem [resolvable:$true] %s28_s20 }
  0x10   :  { %s1964_s21 = scalar_lea.vmem %s29_s20, 2048  ;;  %p1969_p6 = scmp.lt.s32.totalorder %s29_s20, %s29_s20 }
  0x11   :  { %p1965_p5 = scmp.ne.s32.totalorder %s29_s20, %s1964_s21  ;;  %p1970_p7 = scmp.lt.s32.totalorder %s1964_s21, %s1964_s21 }
  0x13   :  { %p1971_p8 = por %p1970_p7, %p1969_p6 }
  0x15   :  { %p1972_p9 = pnand %p1971_p8, %p1965_p5 }
  0x17   :  { %1975 = shalt.err (!%p1972_p9)
}
  0x18   :  { %34 = dma.hbm_to_vmem [thread:$0]  %s2780_s1, 2048, %s29_s20, [#allocation6], %s2003_s15, %s2003_s15, %s2004_s16  }
  0x19   :  { %1996 = dma.done.wait [#allocation3], 2048  }
  0x1a   :  { %1997 = vsyncadd [#allocation3], 4294965248 }
  0x1b   :  { %1998 = dma.done.wait [#allocation6], 2048  }
  0x1c   :  { %1999 = vsyncadd [#allocation6], 4294965248  ;;  %v74_v0 = vld [vmem:[#allocation5 + $0x78] sm:$0xff]  ;;  %v73_v1 = vld [vmem:[#allocation5 + $0x70] sm:$0xff] }
  0x1d   :  { %v72_v2 = vld [vmem:[#allocation5 + $0x68] sm:$0xff]  ;;  %v2039_v3 = vand.u32 4294901760, %v74_v0  ;;  %v2041_v4 = vand.u32 4294901760, %v73_v1  ;;  %v71_v6 = vld [vmem:[#allocation5 + $0x60] sm:$0xff]  ;;  %v70_v7 = vld [vmem:[#allocation5 + $0x58] sm:$0xff] }
  0x1e   :  { %v2043_v5 = vand.u32 4294901760, %v72_v2  ;;  %v69_v8 = vld [vmem:[#allocation5 + $0x50] sm:$0xff]  ;;  %v2045_v9 = vand.u32 4294901760, %v71_v6  ;;  %v2047_v10 = vand.u32 4294901760, %v70_v7  ;;  %v68_v12 = vld [vmem:[#allocation5 + $0x48] sm:$0xff]  ;;  %v67_v13 = vld [vmem:[#allocation5 + $0x40] sm:$0xff] }
  0x1f   :  { %v2049_v11 = vand.u32 4294901760, %v69_v8  ;;  %1595 = vmatprep.subr.mxu0 %v2039_v3  ;;  %v2053_v14 = vsub.f32 %v74_v0, %v2039_v3  ;;  %v2056_v15 = vsub.f32 %v73_v1, %v2041_v4  ;;  %v2058_v16 = vand.u32 4294901760, %v68_v12  ;;  %v66_v18 = vld [vmem:[#allocation5 + $0x38] sm:$0xff]  ;;  %v65_v25 = vld [vmem:[#allocation5 + $0x30] sm:$0xff]  ;;  %v64_v35 = vld [vmem:[#allocation5 + $0x28] sm:$0xff] }
  0x20   :  { %v2061_v17 = vsub.f32 %v72_v2, %v2043_v5  ;;  %1596 = vmatpush3.msra.mxu0 %v2039_v3  ;;  %v2065_v19 = vsub.f32 %v71_v6, %v2045_v9  ;;  %v2068_v20 = vsub.f32 %v70_v7, %v2047_v10  ;;  %v2080_v24 = vand.u32 4294901760, %v67_v13  ;;  %v63_v40 = vld [vmem:[#allocation5 + $0x20] sm:$0xff]  ;;  %v44_v49 = vld [vmem:[#allocation2 + $0x8] sm:$0xff]  ;;  %v62_v53 = vld [vmem:[#allocation5 + $0x18] sm:$0xff] }
  0x21   :  { %1597 = vmatprep.subr.mxu0 %v2041_v4  ;;  %v2072_v21 = vand.u32 4294901760, %v2053_v14  ;;  %v2075_v22 = vand.u32 4294901760, %v2056_v15  ;;  %v2086_v27 = vand.u32 4294901760, %v66_v18  ;;  %v2092_v29 = vsub.f32 %v69_v8, %v2049_v11  ;;  %v43_v47 = vld [vmem:[#allocation2] sm:$0xff]  ;;  %v61_v59 = vld [vmem:[#allocation5 + $0x10] sm:$0xff]  ;;  %v60_v6 = vld [vmem:[#allocation5 + $0x8] sm:$0xff] }
  0x22   :  { %v2078_v23 = vand.u32 4294901760, %v2061_v17  ;;  %1598 = vmatpush3.msra.mxu0 %v2041_v4  ;;  %v2084_v26 = vand.u32 4294901760, %v2065_v19  ;;  %v2089_v28 = vand.u32 4294901760, %v2068_v20  ;;  %v2102_v33 = vsub.f32 %v68_v12, %v2058_v16  ;;  %v45_v63 = vld [vmem:[#allocation2 + $0x10] sm:$0xff] }
  0x23   :  { %2823 = vst [vmem:[#allocation11_spill] sm:$0xff] %v2075_v22  ;;  %1599 = vmatprep.subr.mxu0 %v2043_v5  ;;  %v327_v30 = vsub.f32 %v2053_v14, %v2072_v21  ;;  %v334_v31 = vsub.f32 %v2056_v15, %v2075_v22  ;;  %v2105_v34 = vand.u32 4294901760, %v65_v25  ;;  %v2111_v39 = vand.u32 4294901760, %v2092_v29  ;;  %v52_v22 = vld [vmem:[#allocation2 + $0x48] sm:$0xff] }
  0x24   :  { %2824 = vst [vmem:[#allocation12_spill] sm:$0xff] %v2078_v23  ;;  %2825 = vst [vmem:[#allocation13_spill] sm:$0xff] %v2084_v26  ;;  %v341_v32 = vsub.f32 %v2061_v17, %v2078_v23  ;;  %1600 = vmatpush3.msra.mxu0 %v2043_v5  ;;  %v348_v38 = vsub.f32 %v2065_v19, %v2084_v26  ;;  %v2115_v41 = vand.u32 4294901760, %v2102_v33  ;;  %v2123_v45 = vand.u32 4294901760, %v64_v35 }
  0x25   :  { %2826 = vst [vmem:[#allocation14_spill] sm:$0xff] %v2089_v28  ;;  %1601 = vmatprep.subr.mxu0 %v2045_v9  ;;  %v328_v36 = vand.u32 4294901760, %v327_v30  ;;  %v335_v37 = vand.u32 4294901760, %v334_v31  ;;  %2827 = vst [vmem:[#allocation15_spill] sm:$0xff] %v2111_v39  ;;  %v2118_v42 = vsub.f32 %v67_v13, %v2080_v24  ;;  %v355_v44 = vsub.f32 %v2068_v20, %v2089_v28  ;;  %v59_v31 = vld [vmem:[#allocation5] sm:$0xff] }
  0x26   :  { %1602 = vmatpush3.msra.mxu0 %v2045_v9  ;;  %2828 = vst [vmem:[#allocation16_spill] sm:$0xff] %v2115_v41  ;;  %v342_v43 = vand.u32 4294901760, %v341_v32  ;;  %v2126_v46 = vsub.f32 %v66_v18, %v2086_v27  ;;  %v2129_v48 = vand.u32 4294901760, %v63_v40  ;;  %v349_v50 = vand.u32 4294901760, %v348_v38  ;;  %v46_v18 = vld [vmem:[#allocation2 + $0x18] sm:$0xff] }
  0x27   :  { %1603 = vmatprep.subr.mxu0 %v2047_v10  ;;  %1651 = vmatprep.subr.mxu1 %v328_v36  ;;  %v362_v51 = vsub.f32 %v2092_v29, %v2111_v39  ;;  %v2135_v52 = vand.u32 4294901760, %v2118_v42  ;;  %v2138_v54 = vsub.f32 %v65_v25, %v2105_v34  ;;  %v369_v55 = vsub.f32 %v2102_v33, %v2115_v41  ;;  %v49_v41 = vld [vmem:[#allocation2 + $0x30] sm:$0xff] }
  0x28   :  { %1604 = vmatpush3.msra.mxu0 %v2047_v10  ;;  %1652 = vmatpush3.msra.mxu1 %v328_v36  ;;  %v2143_v56 = vand.u32 4294901760, %v43_v47  ;;  %v356_v57 = vand.u32 4294901760, %v355_v44  ;;  %v2147_v58 = vand.u32 4294901760, %v2126_v46  ;;  %v2150_v60 = vsub.f32 %v64_v35, %v2123_v45 }
  0x29   :  { %1605 = vmatprep.subr.mxu0 %v2049_v11  ;;  %1653 = vmatprep.subr.mxu1 %v335_v37  ;;  %2829 = vst [vmem:[#allocation17_spill] sm:$0xff] %v2135_v52  ;;  %v2152_v61 = vand.u32 4294901760, %v44_v49  ;;  %v2155_v62 = vand.u32 4294901760, %v62_v53  ;;  %v363_v0 = vand.u32 4294901760, %v362_v51  ;;  %v376_v1 = vsub.f32 %v2118_v42, %v2135_v52  ;;  %v50_v52 = vld [vmem:[#allocation2 + $0x38] sm:$0xff] }
  0x2a   :  { %1606 = vmatpush3.msra.mxu0 %v2049_v11  ;;  %1654 = vmatpush3.msra.mxu1 %v335_v37  ;;  %2830 = vst [vmem:[#allocation18_spill] sm:$0xff] %v2147_v58  ;;  %v2161_v2 = vand.u32 4294901760, %v2138_v54  ;;  %v2164_v7 = vsub.f32 %v63_v40, %v2129_v48  ;;  %v370_v8 = vand.u32 4294901760, %v369_v55  ;;  %v2167_v12 = vand.u32 4294901760, %v61_v59 }
  0x2b   :  { %1607 = vmatprep.subr.mxu0 %v2058_v16  ;;  %1655 = vmatprep.subr.mxu1 %v342_v43  ;;  %v2170_v13 = vsub.f32 %v43_v47, %v2143_v56  ;;  %v383_v25 = vsub.f32 %v2126_v46, %v2147_v58  ;;  %v2176_v30 = vand.u32 4294901760, %v2150_v60  ;;  %v2179_v32 = vsub.f32 %v44_v49, %v2152_v61  ;;  %v47_v47 = vld [vmem:[#allocation2 + $0x20] sm:$0xff] }
  0x2c   :  { %1608 = vmatpush3.msra.mxu0 %v2058_v16  ;;  %1656 = vmatpush3.msra.mxu1 %v342_v43  ;;  %2831 = vst [vmem:[#allocation19_spill] sm:$0xff] %v2161_v2  ;;  %v2181_v35 = vand.u32 4294901760, %v45_v63  ;;  %v2184_v36 = vand.u32 4294901760, %v60_v6  ;;  %v2187_v37 = vsub.f32 %v62_v53, %v2155_v62  ;;  %v377_v38 = vand.u32 4294901760, %v376_v1 }
  0x2d   :  { %1609 = vmatprep.subr.mxu0 %v2080_v24  ;;  %1657 = vmatprep.subr.mxu1 %v349_v50  ;;  %2832 = vst [vmem:[#allocation20_spill] sm:$0xff] %v2176_v30  ;;  %v390_v40 = vsub.f32 %v2138_v54, %v2161_v2  ;;  %v2193_v43 = vand.u32 4294901760, %v2164_v7  ;;  %v2195_v44 = vand.u32 4294901760, %v46_v18  ;;  %v2198_v49 = vand.u32 4294901760, %v59_v31 }
  0x2e   :  { %1610 = vmatpush3.msra.mxu0 %v2080_v24  ;;  %1658 = vmatpush3.msra.mxu1 %v349_v50  ;;  %2833 = vst [vmem:[#allocation21_spill] sm:$0xff] %v2184_v36  ;;  %v2202_v51 = vsub.f32 %v61_v59, %v2167_v12  ;;  %v384_v53 = vand.u32 4294901760, %v383_v25  ;;  %v397_v55 = vsub.f32 %v2150_v60, %v2176_v30  ;;  %v2213_v50 = vand.u32 4294901760, %v2187_v37 }
  0x2f   :  { %1611 = vmatprep.subr.mxu0 %v2086_v27  ;;  %1659 = vmatprep.subr.mxu1 %v356_v57  ;;  %2834 = vst [vmem:[#allocation22_spill] sm:$0xff] %v2193_v43  ;;  %2835 = vst [vmem:[#allocation23_spill] sm:$0xff] %v2198_v49  ;;  %v2209_v1 = vsub.f32 %v45_v63, %v2181_v35  ;;  %v2216_v59 = vsub.f32 %v60_v6, %v2184_v36  ;;  %v2218_v2 = vand.u32 4294901760, %v47_v47 }
  0x30   :  { %1612 = vmatpush3.msra.mxu0 %v2086_v27  ;;  %1660 = vmatpush3.msra.mxu1 %v356_v57  ;;  %2837 = vst [vmem:[#allocation25_spill] sm:$0xff] %v2213_v50  ;;  %v391_v25 = vand.u32 4294901760, %v390_v40  ;;  %v404_v63 = vsub.f32 %v2164_v7, %v2193_v43  ;;  %v2224_v57 = vsub.f32 %v46_v18, %v2195_v44  ;;  %v2231_v30 = vand.u32 4294901760, %v2202_v51 }
  0x31   :  { %1613 = vmatprep.subr.mxu0 %v2105_v34  ;;  %1661 = vmatprep.subr.mxu1 %v363_v0  ;;  %2836 = vst [vmem:[#allocation24_spill] sm:$0xff] %v2209_v1  ;;  %v398_v40 = vand.u32 4294901760, %v397_v55  ;;  %v2840_v43 = vand.u32 4294901760, %v2179_v32  ;;  %v2247_v39 = vand.u32 4294901760, %v2216_v59  ;;  %v2250_v55 = vsub.f32 %v47_v47, %v2218_v2 }
  0x32   :  { %1614 = vmatpush3.msra.mxu0 %v2105_v34  ;;  %1662 = vmatpush3.msra.mxu1 %v363_v0  ;;  %v48_v0 = vld [vmem:[#allocation2 + $0x28] sm:$0xff]  ;;  %2839 = vst [vmem:[#allocation26_spill] sm:$0xff] %v2231_v30  ;;  %v2260_v26 = vand.u32 4294901760, %v49_v41 }
  0x33   :  { %1615 = vmatprep.subr.mxu0 %v2123_v45  ;;  %1663 = vmatprep.subr.mxu1 %v370_v8  ;;  %v2233_v58 = vand.u32 4294901760, %v48_v0  ;;  %v176_v18 = vsub.f32 %v2179_v32, %v2840_v43  ;;  %2841 = vst [vmem:[#allocation27_spill] sm:$0xff] %v2247_v39  ;;  %v405_v43 = vand.u32 4294901760, %v404_v63  ;;  %v2842_v63 = vand.u32 4294901760, %v2209_v1 }
  0x34   :  { %1616 = vmatpush3.msra.mxu0 %v2123_v45  ;;  %1664 = vmatpush3.msra.mxu1 %v370_v8  ;;  %v2838_v8 = vand.u32 4294901760, %v2170_v13 }
  0x35   :  { %1617 = vmatprep.subr.mxu0 %v2129_v48  ;;  %1665 = vmatprep.subr.mxu1 %v377_v38  ;;  %v2258_v28 = vsub.f32 %v48_v0, %v2233_v58  ;;  %v177_v47 = vand.u32 4294901760, %v176_v18  ;;  %v425_v0 = vsub.f32 %v2216_v59, %v2247_v39  ;;  %v2843_v18 = vand.u32 4294901760, %v2224_v57 }
  0x36   :  { %1618 = vmatpush3.msra.mxu0 %v2129_v48  ;;  %1666 = vmatpush3.msra.mxu1 %v377_v38  ;;  %v166_v6 = vsub.f32 %v2170_v13, %v2838_v8  ;;  %v2241_v38 = vsub.f32 %v59_v31, %v2198_v49  ;;  %v411_v8 = vsub.f32 %v2187_v37, %v2213_v50 }
  0x37   :  { %1619 = vmatprep.subr.mxu0 %v2155_v62  ;;  %1667 = vmatprep.subr.mxu1 %v384_v53  ;;  %v418_v50 = vsub.f32 %v2202_v51, %v2231_v30  ;;  %v186_v31 = vsub.f32 %v2209_v1, %v2842_v63  ;;  %v2273_v30 = vand.u32 4294901760, %v50_v52  ;;  %v196_v63 = vsub.f32 %v2224_v57, %v2843_v18  ;;  %v51_v1 = vld [vmem:[#allocation2 + $0x40] sm:$0xff] }
  0x38   :  { %1620 = vmatpush3.msra.mxu0 %v2155_v62  ;;  %1668 = vmatpush3.msra.mxu1 %v384_v53  ;;  %v167_v53 = vand.u32 4294901760, %v166_v6  ;;  %v2267_v23 = vand.u32 4294901760, %v2241_v38  ;;  %v2282_v39 = vsub.f32 %v49_v41, %v2260_v26  ;;  %v426_v18 = vand.u32 4294901760, %v425_v0 }
  0x39   :  { %1621 = vmatprep.subr.mxu0 %v2167_v12  ;;  %1669 = vmatprep.subr.mxu1 %v391_v25  ;;  %v187_v6 = vand.u32 4294901760, %v186_v31  ;;  %v2293_v41 = vand.u32 4294901760, %v51_v1  ;;  %v2301_v0 = vand.u32 4294901760, %v52_v22 }
  0x3a   :  { %1622 = vmatpush3.msra.mxu0 %v2167_v12  ;;  %1670 = vmatpush3.msra.mxu1 %v391_v25  ;;  %v412_v25 = vand.u32 4294901760, %v411_v8  ;;  %v2817_v8 = vand.u32 4294901760, %v2258_v28 }
  0x3b   :  { %1623 = vmatprep.subr.mxu0 %v2184_v36  ;;  %1671 = vmatprep.subr.mxu1 %v398_v40 }
  0x3c   :  { %1624 = vmatpush3.msra.mxu0 %v2184_v36  ;;  %1672 = vmatpush3.msra.mxu1 %v398_v40  ;;  %v419_v40 = vand.u32 4294901760, %v418_v50  ;;  %v432_v36 = vsub.f32 %v2241_v38, %v2267_v23  ;;  %v216_v31 = vsub.f32 %v2258_v28, %v2817_v8  ;;  %v54_v8 = vld [vmem:[#allocation2 + $0x58] sm:$0xff] }
  0x3d   :  { %1625 = vmatprep.subr.mxu0 %v2198_v49  ;;  %1673 = vmatprep.subr.mxu1 %v405_v43 }
  0x3e   :  { %1626 = vmatpush3.msra.mxu0 %v2198_v49  ;;  %1627 = vmatprep.mubr.f32.mxu0 %v167_v53  ;;  %v2844_v49 = vand.u32 4294901760, %v2250_v55  ;;  %v2291_v53 = vsub.f32 %v50_v52, %v2273_v30  ;;  %v433_v52 = vand.u32 4294901760, %v432_v36 }
  0x3f   :  { %1674 = vmatpush3.msra.mxu1 %v405_v43  ;;  %1628 = vmatmul.mubr.f32.vlgmr.msra.gmra.mxu0 %v177_v47  ;;  %v197_v43 = vand.u32 4294901760, %v196_v63  ;;  %v2821_v47 = vand.u32 4294901760, %v2282_v39  ;;  %v2306_v63 = vsub.f32 %v51_v1, %v2293_v41 }
  0x40   :  { %1675 = vmatprep.subr.mxu1 %v412_v25  ;;  %1707 = vmatprep.subr.mxu0 %v2053_v14  ;;  %v206_v50 = vsub.f32 %v2250_v55, %v2844_v49  ;;  %v53_v49 = vld [vmem:[#allocation2 + $0x50] sm:$0xff] }
  0x41   :  { %1676 = vmatpush3.msra.mxu1 %v412_v25  ;;  %1708 = vmatpush3.msra.mxu0 %v2053_v14  ;;  %v2819_v25 = vand.u32 4294901760, %v2291_v53  ;;  %v226_v36 = vsub.f32 %v2282_v39, %v2821_v47 }
  0x42   :  { %1677 = vmatprep.subr.mxu1 %v419_v40  ;;  %1709 = vmatprep.subr.mxu0 %v2056_v15  ;;  %v207_v14 = vand.u32 4294901760, %v206_v50 }
  0x43   :  { %1630 = vmatprep.mubr.f32.mxu0 %v187_v6  ;;  %1678 = vmatpush3.msra.mxu1 %v419_v40  ;;  %v217_v6 = vand.u32 4294901760, %v216_v31  ;;  %v2316_v40 = vand.u32 4294901760, %v53_v49  ;;  %v236_v1 = vsub.f32 %v2291_v53, %v2819_v25  ;;  %v227_v50 = vand.u32 4294901760, %v226_v36 }
  0x44   :  { %1710 = vmatpush3.msra.mxu0 %v2056_v15  ;;  %1679 = vmatprep.subr.mxu1 %v426_v18  ;;  %v2314_v15 = vsub.f32 %v52_v22, %v2301_v0  ;;  %v55_v22 = vld [vmem:[#allocation2 + $0x60] sm:$0xff] }
  0x45   :  { %1631 = vmatmul.mubr.f32.gmra.mxu0 %v197_v43  ;;  %1711 = vmatprep.subr.mxu0 %v2061_v17  ;;  %v2330_v31 = vsub.f32 %v53_v49, %v2316_v40  ;;  %v2342_v36 = vand.u32 4294901760, %v55_v22 }
  0x46   :  { %1680 = vmatpush3.msra.mxu1 %v426_v18  ;;  %1712 = vmatpush3.msra.mxu0 %v2061_v17  ;;  %v2818_v17 = vand.u32 4294901760, %v2306_v63  ;;  %v2323_v18 = vand.u32 4294901760, %v54_v8  ;;  %v2820_v43 = vand.u32 4294901760, %v2314_v15 }
  0x47   :  { %1681 = vmatprep.subr.mxu1 %v433_v52  ;;  %1713 = vmatprep.subr.mxu0 %v2065_v19  ;;  %v2822_v49 = vand.u32 4294901760, %v2330_v31  ;;  %v2358_v25 = vsub.f32 %v55_v22, %v2342_v36 }
  0x48   :  { %1633 = vmatprep.mubr.f32.mxu0 %v207_v14  ;;  %1682 = vmatpush3.msra.mxu1 %v433_v52  ;;  %v56_v52 = vld [vmem:[#allocation2 + $0x68] sm:$0xff]  ;;  %v246_v14 = vsub.f32 %v2306_v63, %v2818_v17 }
  0x49   :  { %1683 = vmatprep.mubr.f32.mxu1 %v2143_v56  ;;  %1714 = vmatpush3.msra.mxu0 %v2065_v19  ;;  %v237_v19 = vand.u32 4294901760, %v236_v1  ;;  %v2351_v1 = vand.u32 4294901760, %v56_v52  ;;  %v285_v22 = vand.u32 4294901760, %v2358_v25 }
  0x4a   :  { %1634 = vmatmul.mubr.f32.gmra.mxu0 %v217_v6  ;;  %1684 = vmatmul.mubr.f32.vlgmr.msra.gmra.mxu1 %v2152_v61  ;;  %v2340_v6 = vsub.f32 %v54_v8, %v2323_v18  ;;  %v57_v8 = vld [vmem:[#allocation2 + $0x70] sm:$0xff]  ;;  %v247_v17 = vand.u32 4294901760, %v246_v14 }
  0x4b   :  { %1715 = vmatprep.subr.mxu0 %v2068_v20  ;;  %1763 = vmatprep.subr.mxu1 %v2039_v3  ;;  %v2368_v14 = vsub.f32 %v56_v52, %v2351_v1  ;;  %v2370_v47 = vand.u32 4294901760, %v57_v8 }
  0x4c   :  { %1716 = vmatpush3.msra.mxu0 %v2068_v20  ;;  %1764 = vmatpush3.msra.mxu1 %v2039_v3  ;;  %v256_v20 = vsub.f32 %v2314_v15, %v2820_v43  ;;  %v58_v43 = vld [vmem:[#allocation2 + $0x78] sm:$0xff] }
  0x4d   :  { %1717 = vmatprep.subr.mxu0 %v2092_v29  ;;  %1765 = vmatprep.subr.mxu1 %v2041_v4 }
  0x4e   :  { %1636 = vmatprep.mubr.f32.mxu0 %v227_v50  ;;  %1686 = vmatprep.mubr.f32.mxu1 %v2181_v35  ;;  %v275_v50 = vand.u32 4294901760, %v2340_v6 }
  0x4f   :  { %1718 = vmatpush3.msra.mxu0 %v2092_v29  ;;  %1766 = vmatpush3.msra.mxu1 %v2041_v4  ;;  %v257_v29 = vand.u32 4294901760, %v256_v20  ;;  %v2379_v20 = vand.u32 4294901760, %v58_v43 }
  0x50   :  { %1637 = vmatmul.mubr.f32.gmra.mxu0 %v237_v19  ;;  %1687 = vmatmul.mubr.f32.gmra.mxu1 %v2195_v44  ;;  %v266_v19 = vsub.f32 %v2330_v31, %v2822_v49  ;;  %v2386_v49 = vsub.f32 %v57_v8, %v2370_v47 }
  0x51   :  { %1719 = vmatprep.subr.mxu0 %v2102_v33  ;;  %1767 = vmatprep.subr.mxu1 %v2043_v5 }
  0x52   :  { %1720 = vmatpush3.msra.mxu0 %v2102_v33  ;;  %1768 = vmatpush3.msra.mxu1 %v2043_v5  ;;  %v276_v33 = vsub.f32 %v2340_v6, %v275_v50  ;;  %v267_v52 = vand.u32 4294901760, %v266_v19  ;;  %v2396_v19 = vsub.f32 %v58_v43, %v2379_v20  ;;  %v305_v8 = vand.u32 4294901760, %v2386_v49 }
  0x53   :  { %1721 = vmatprep.subr.mxu0 %v2118_v42  ;;  %1769 = vmatprep.subr.mxu1 %v2045_v9 }
  0x54   :  { %1639 = vmatprep.mubr.f32.mxu0 %v247_v17  ;;  %1689 = vmatprep.mubr.f32.mxu1 %v2218_v2  ;;  %v295_v17 = vand.u32 4294901760, %v2368_v14 }
  0x55   :  { %1722 = vmatpush3.msra.mxu0 %v2118_v42  ;;  %1770 = vmatpush3.msra.mxu1 %v2045_v9  ;;  %v277_v42 = vand.u32 4294901760, %v276_v33  ;;  %v315_v33 = vand.u32 4294901760, %v2396_v19 }
  0x56   :  { %1640 = vmatmul.mubr.f32.gmra.mxu0 %v257_v29  ;;  %1690 = vmatmul.mubr.f32.gmra.mxu1 %v2233_v58  ;;  %v286_v29 = vsub.f32 %v2358_v25, %v285_v22 }
  0x57   :  { %1723 = vmatprep.subr.mxu0 %v2126_v46  ;;  %1771 = vmatprep.subr.mxu1 %v2047_v10 }
  0x58   :  { %1724 = vmatpush3.msra.mxu0 %v2126_v46  ;;  %1772 = vmatpush3.msra.mxu1 %v2047_v10  ;;  %v296_v46 = vsub.f32 %v2368_v14, %v295_v17  ;;  %v287_v43 = vand.u32 4294901760, %v286_v29 }
  0x59   :  { %1725 = vmatprep.subr.mxu0 %v2138_v54  ;;  %1773 = vmatprep.subr.mxu1 %v2049_v11 }
  0x5a   :  { %1642 = vmatprep.mubr.f32.mxu0 %v267_v52  ;;  %1692 = vmatprep.mubr.f32.mxu1 %v2260_v26  ;;  %v297_v52 = vand.u32 4294901760, %v296_v46  ;;  %v2851_v46 = vand.u32 4294901760, %v2170_v13 }
  0x5b   :  { %1726 = vmatpush3.msra.mxu0 %v2138_v54  ;;  %1774 = vmatpush3.msra.mxu1 %v2049_v11  ;;  %v306_v54 = vsub.f32 %v2386_v49, %v305_v8 }
  0x5c   :  { %1643 = vmatmul.mubr.f32.gmra.mxu0 %v277_v42  ;;  %1693 = vmatmul.mubr.f32.gmra.mxu1 %v2273_v30  ;;  %v316_v42 = vsub.f32 %v2396_v19, %v315_v33 }
  0x5d   :  { %1727 = vmatprep.subr.mxu0 %v2150_v60  ;;  %1775 = vmatprep.subr.mxu1 %v2058_v16 }
  0x5e   :  { %1728 = vmatpush3.msra.mxu0 %v2150_v60  ;;  %1776 = vmatpush3.msra.mxu1 %v2058_v16  ;;  %v307_v60 = vand.u32 4294901760, %v306_v54  ;;  %v317_v29 = vand.u32 4294901760, %v316_v42  ;;  %v2854_v54 = vld [vmem:[#allocation15_spill] sm:$0xff]  ;;  %v2857_v42 = vld [vmem:[#allocation16_spill] sm:$0xff] }
  0x5f   :  { %1729 = vmatprep.subr.mxu0 %v2164_v7  ;;  %1777 = vmatprep.subr.mxu1 %v2080_v24 }
  0x60   :  { %1645 = vmatprep.mubr.f32.mxu0 %v287_v43  ;;  %1695 = vmatprep.mubr.f32.mxu1 %v2293_v41  ;;  %v2852_v43 = vand.u32 4294901760, %v2179_v32 }
  0x61   :  { %1730 = vmatpush3.msra.mxu0 %v2164_v7  ;;  %1778 = vmatpush3.msra.mxu1 %v2080_v24  ;;  %v2845_v7 = vld [vmem:[#allocation11_spill] sm:$0xff] }
  0x62   :  { %1646 = vmatmul.mubr.f32.gmra.mxu0 %v297_v52  ;;  %1696 = vmatmul.mubr.f32.gmra.mxu1 %v2301_v0  ;;  %v2853_v52 = vld [vmem:[#allocation14_spill] sm:$0xff] }
  0x63   :  { %1731 = vmatprep.subr.mxu0 %v2187_v37  ;;  %1779 = vmatprep.subr.mxu1 %v2086_v27 }
  0x64   :  { %1732 = vmatpush3.msra.mxu0 %v2187_v37  ;;  %1780 = vmatpush3.msra.mxu1 %v2086_v27  ;;  %v2846_v37 = vld [vmem:[#allocation24_spill] sm:$0xff] }
  0x65   :  { %1733 = vmatprep.subr.mxu0 %v2202_v51  ;;  %1781 = vmatprep.subr.mxu1 %v2105_v34 }
  0x66   :  { %1648 = vmatprep.mubr.f32.mxu0 %v307_v60  ;;  %1698 = vmatprep.mubr.f32.mxu1 %v2316_v40  ;;  %v2861_v60 = vld [vmem:[#allocation18_spill] sm:$0xff] }
  0x67   :  { %1734 = vmatpush3.msra.mxu0 %v2202_v51  ;;  %1782 = vmatpush3.msra.mxu1 %v2105_v34  ;;  %v2847_v51 = vld [vmem:[#allocation21_spill] sm:$0xff] }
  0x68   :  { %1649 = vmatmul.mubr.f32.gmra.mxu0 %v317_v29  ;;  %1699 = vmatmul.mubr.f32.gmra.mxu1 %v2323_v18 }
  0x69   :  { %1735 = vmatprep.subr.mxu0 %v2216_v59  ;;  %1783 = vmatprep.subr.mxu1 %v2123_v45 }
  0x6a   :  { %1736 = vmatpush3.msra.mxu0 %v2216_v59  ;;  %1784 = vmatpush3.msra.mxu1 %v2123_v45  ;;  %v2848_v59 = vld [vmem:[#allocation12_spill] sm:$0xff] }
  0x6b   :  { %1737 = vmatprep.subr.mxu0 %v2241_v38  ;;  %1785 = vmatprep.subr.mxu1 %v2129_v48 }
  0x6c   :  { %1701 = vmatprep.mubr.f32.mxu1 %v2342_v36  ;;  %1738 = vmatpush3.msra.mxu0 %v2241_v38  ;;  %v2850_v38 = vld [vmem:[#allocation13_spill] sm:$0xff] }
  0x6d   :  { %1739 = vmatprep.mubr.f32.mxu0 %v2170_v13  ;;  %1786 = vmatpush3.msra.mxu1 %v2129_v48  ;;  %v2855_v13 = vand.u32 4294901760, %v2846_v37 }
  0x6e   :  { %1702 = vmatmul.mubr.f32.gmra.mxu1 %v2351_v1  ;;  %1740 = vmatmul.mubr.f32.vlgmr.msra.gmra.mxu0 %v2179_v32  ;;  %v2856_v32 = vand.u32 4294901760, %v2224_v57 }
  0x6f   :  { %1787 = vmatprep.subr.mxu1 %v2155_v62  ;;  %1819 = vmatprep.subr.mxu0 %v2072_v21 }
  0x70   :  { %1788 = vmatpush3.msra.mxu1 %v2155_v62  ;;  %1820 = vmatpush3.msra.mxu0 %v2072_v21  ;;  %v2849_v21 = vld [vmem:[#allocation23_spill] sm:$0xff] }
  0x71   :  { %1789 = vmatprep.subr.mxu1 %v2167_v12  ;;  %1821 = vmatprep.subr.mxu0 %v2845_v7 }
  0x72   :  { %1704 = vmatprep.mubr.f32.mxu1 %v2370_v47  ;;  %1742 = vmatprep.mubr.f32.mxu0 %v2846_v37 }
  0x73   :  { %1790 = vmatpush3.msra.mxu1 %v2167_v12  ;;  %1822 = vmatpush3.msra.mxu0 %v2845_v7 }
  0x74   :  { %1705 = vmatmul.mubr.f32.gmra.mxu1 %v2379_v20  ;;  %1743 = vmatmul.mubr.f32.gmra.mxu0 %v2224_v57  ;;  %v2860_v57 = vand.u32 4294901760, %v2258_v28 }
  0x75   :  { %1791 = vmatprep.subr.mxu1 %v2847_v51  ;;  %1823 = vmatprep.subr.mxu0 %v2848_v59 }
  0x76   :  { %1792 = vmatpush3.msra.mxu1 %v2847_v51  ;;  %1824 = vmatpush3.msra.mxu0 %v2848_v59 }
  0x77   :  { %1793 = vmatprep.subr.mxu1 %v2849_v21  ;;  %1825 = vmatprep.subr.mxu0 %v2850_v38 }
  0x78   :  { %1745 = vmatprep.mubr.f32.mxu0 %v2250_v55  ;;  %1794 = vmatpush3.msra.mxu1 %v2849_v21 }
  0x79   :  { %1795 = vmatprep.mubr.f32.mxu1 %v2851_v46  ;;  %1826 = vmatpush3.msra.mxu0 %v2850_v38 }
  0x7a   :  { %1746 = vmatmul.mubr.f32.gmra.mxu0 %v2258_v28  ;;  %1796 = vmatmul.mubr.f32.vlgmr.msra.gmra.mxu1 %v2852_v43  ;;  %v2864_v28 = vand.u32 4294901760, %v2291_v53 }
  0x7b   :  { %1827 = vmatprep.subr.mxu0 %v2853_v52  ;;  %1875 = vmatprep.subr.mxu1 %v2039_v3 }
  0x7c   :  { %1828 = vmatpush3.msra.mxu0 %v2853_v52  ;;  %1876 = vmatpush3.msra.mxu1 %v2039_v3  ;;  %v2858_v3 = vld [vmem:[#allocation17_spill] sm:$0xff] }
  0x7d   :  { %1829 = vmatprep.subr.mxu0 %v2854_v54  ;;  %1877 = vmatprep.subr.mxu1 %v2041_v4 }
  0x7e   :  { %1748 = vmatprep.mubr.f32.mxu0 %v2282_v39  ;;  %1798 = vmatprep.mubr.f32.mxu1 %v2855_v13 }
  0x7f   :  { %1830 = vmatpush3.msra.mxu0 %v2854_v54  ;;  %1878 = vmatpush3.msra.mxu1 %v2041_v4  ;;  %v2859_v4 = vand.u32 4294901760, %v2250_v55  ;;  %v2865_v55 = vld [vmem:[#allocation20_spill] sm:$0xff] }
  0x80   :  { %1749 = vmatmul.mubr.f32.gmra.mxu0 %v2291_v53  ;;  %1799 = vmatmul.mubr.f32.gmra.mxu1 %v2856_v32  ;;  %v2869_v53 = vld [vmem:[#allocation25_spill] sm:$0xff] }
  0x81   :  { %1831 = vmatprep.subr.mxu0 %v2857_v42  ;;  %1879 = vmatprep.subr.mxu1 %v2043_v5 }
  0x82   :  { %1832 = vmatpush3.msra.mxu0 %v2857_v42  ;;  %1880 = vmatpush3.msra.mxu1 %v2043_v5  ;;  %v2862_v5 = vld [vmem:[#allocation19_spill] sm:$0xff] }
  0x83   :  { %1833 = vmatprep.subr.mxu0 %v2858_v3  ;;  %1881 = vmatprep.subr.mxu1 %v2045_v9 }
  0x84   :  { %1751 = vmatprep.mubr.f32.mxu0 %v2306_v63  ;;  %1801 = vmatprep.mubr.f32.mxu1 %v2859_v4 }
  0x85   :  { %1834 = vmatpush3.msra.mxu0 %v2858_v3  ;;  %1882 = vmatpush3.msra.mxu1 %v2045_v9  ;;  %v2863_v9 = vand.u32 4294901760, %v2282_v39  ;;  %v2868_v39 = vand.u32 4294901760, %v2314_v15 }
  0x86   :  { %1752 = vmatmul.mubr.f32.gmra.mxu0 %v2314_v15  ;;  %1802 = vmatmul.mubr.f32.gmra.mxu1 %v2860_v57 }
  0x87   :  { %1835 = vmatprep.subr.mxu0 %v2861_v60  ;;  %1883 = vmatprep.subr.mxu1 %v2047_v10 }
  0x88   :  { %1836 = vmatpush3.msra.mxu0 %v2861_v60  ;;  %1884 = vmatpush3.msra.mxu1 %v2047_v10  ;;  %v2866_v10 = vld [vmem:[#allocation22_spill] sm:$0xff] }
  0x89   :  { %1837 = vmatprep.subr.mxu0 %v2862_v5  ;;  %1885 = vmatprep.subr.mxu1 %v2049_v11 }
  0x8a   :  { %1754 = vmatprep.mubr.f32.mxu0 %v2330_v31  ;;  %1804 = vmatprep.mubr.f32.mxu1 %v2863_v9 }
  0x8b   :  { %1838 = vmatpush3.msra.mxu0 %v2862_v5  ;;  %1886 = vmatpush3.msra.mxu1 %v2049_v11  ;;  %v2867_v11 = vand.u32 4294901760, %v2306_v63  ;;  %v2872_v63 = vld [vmem:[#allocation27_spill] sm:$0xff] }
  0x8c   :  { %1755 = vmatmul.mubr.f32.gmra.mxu0 %v2340_v6  ;;  %1805 = vmatmul.mubr.f32.gmra.mxu1 %v2864_v28 }
  0x8d   :  { %1839 = vmatprep.subr.mxu0 %v2865_v55  ;;  %1887 = vmatprep.subr.mxu1 %v2058_v16 }
  0x8e   :  { %1840 = vmatpush3.msra.mxu0 %v2865_v55  ;;  %1888 = vmatpush3.msra.mxu1 %v2058_v16  ;;  %v2870_v16 = vld [vmem:[#allocation26_spill] sm:$0xff] }
  0x8f   :  { %1841 = vmatprep.subr.mxu0 %v2866_v10  ;;  %1889 = vmatprep.subr.mxu1 %v2080_v24 }
  0x90   :  { %1757 = vmatprep.mubr.f32.mxu0 %v2358_v25  ;;  %1807 = vmatprep.mubr.f32.mxu1 %v2867_v11  ;;  %v2692_v11 = vld [vmem:[%s2781_s2] ss:$0 sm:$0xff]  ;;  %s2006_s2 = smov [#allocation7]  }
  0x91   :  { %1842 = vmatpush3.msra.mxu0 %v2866_v10  ;;  %1890 = vmatpush3.msra.mxu1 %v2080_v24  ;;  %v2871_v24 = vand.u32 4294901760, %v2330_v31  ;;  %s1389_s24 = sshll.u32 %s2006_s2, 4  ;;  %s1390_s24 = int_to_ptr.vmem [resolvable:$true] %s1389_s24 }
  0x92   :  { %1758 = vmatmul.mubr.f32.gmra.mxu0 %v2368_v14  ;;  %1808 = vmatmul.mubr.f32.gmra.mxu1 %v2868_v39  ;;  %s1976_s25 = scalar_lea.vmem %s1390_s24, 2048  ;;  %p1981_p11 = scmp.lt.s32.totalorder %s1390_s24, %s1390_s24 }
  0x93   :  { %1843 = vmatprep.subr.mxu0 %v2869_v53  ;;  %1891 = vmatprep.subr.mxu1 %v2086_v27  ;;  %p1977_p10 = scmp.ne.s32.totalorder %s1390_s24, %s1976_s25  ;;  %p1982_p12 = scmp.lt.s32.totalorder %s1976_s25, %s1976_s25 }
  0x94   :  { %1844 = vmatpush3.msra.mxu0 %v2869_v53  ;;  %1892 = vmatpush3.msra.mxu1 %v2086_v27 }
  0x95   :  { %1845 = vmatprep.subr.mxu0 %v2870_v16  ;;  %1893 = vmatprep.subr.mxu1 %v2105_v34  ;;  %p1983_p13 = por %p1982_p12, %p1981_p11 }
  0x96   :  { %1760 = vmatprep.mubr.f32.mxu0 %v2386_v49  ;;  %1810 = vmatprep.mubr.f32.mxu1 %v2871_v24 }
  0x97   :  { %1846 = vmatpush3.msra.mxu0 %v2870_v16  ;;  %1894 = vmatpush3.msra.mxu1 %v2105_v34  ;;  %p1984_p0 = pnand %p1983_p13, %p1977_p10 }
  0x98   :  { %1761 = vmatmul.mubr.f32.gmra.mxu0 %v2396_v19  ;;  %1811 = vmatmul.mubr.f32.gmra.mxu1 %v275_v50 }
  0x99   :  { %1847 = vmatprep.subr.mxu0 %v2872_v63  ;;  %1895 = vmatprep.subr.mxu1 %v2123_v45 }
  0x9a   :  { %1848 = vmatpush3.msra.mxu0 %v2872_v63  ;;  %1896 = vmatpush3.msra.mxu1 %v2123_v45 }
  0x9b   :  { %1849 = vmatprep.subr.mxu0 %v2267_v23  ;;  %1897 = vmatprep.subr.mxu1 %v2129_v48 }
  0x9c   :  { %1813 = vmatprep.mubr.f32.mxu1 %v285_v22  ;;  %1850 = vmatpush3.msra.mxu0 %v2267_v23 }
  0x9d   :  { %1851 = vmatprep.mubr.f32.mxu0 %v2143_v56  ;;  %1898 = vmatpush3.msra.mxu1 %v2129_v48 }
  0x9e   :  { %1814 = vmatmul.mubr.f32.gmra.mxu1 %v295_v17  ;;  %1852 = vmatmul.mubr.f32.vlgmr.msra.gmra.mxu0 %v2152_v61 }
  0x9f   :  { %1899 = vmatprep.subr.mxu1 %v2155_v62  ;;  %1816 = vmatprep.mubr.f32.mxu1 %v305_v8 }
  0xa0   :  { %1900 = vmatpush3.msra.mxu1 %v2155_v62  ;;  %1854 = vmatprep.mubr.f32.mxu0 %v2181_v35 }
  0xa1   :  { %1901 = vmatprep.subr.mxu1 %v2167_v12 }
  0xa2   :  { %1902 = vmatpush3.msra.mxu1 %v2167_v12  ;;  %1855 = vmatmul.mubr.f32.gmra.mxu0 %v2195_v44 }
  0xa3   :  { %1817 = vmatmul.mubr.f32.gmra.mxu1 %v315_v33  ;;  %1903 = vmatprep.subr.mxu1 %v2847_v51 }
  0xa4   :  { %1904 = vmatpush3.msra.mxu1 %v2847_v51  ;;  %1857 = vmatprep.mubr.f32.mxu0 %v2218_v2 }
  0xa5   :  { %1905 = vmatprep.subr.mxu1 %v2849_v21  ;;  %1907 = vmatprep.mubr.f32.mxu1 %v2143_v56 }
  0xa6   :  { %1906 = vmatpush3.msra.mxu1 %v2849_v21  ;;  %1858 = vmatmul.mubr.f32.gmra.mxu0 %v2233_v58 }
  0xa7   :  { %1908 = vmatmul.mubr.f32.vlgmr.msra.gmra.mxu1 %v2152_v61  ;;  %1860 = vmatprep.mubr.f32.mxu0 %v2260_v26 }
  0xa8   :  { %1910 = vmatprep.mubr.f32.mxu1 %v2181_v35 }
  0xaa   :  { %1861 = vmatmul.mubr.f32.gmra.mxu0 %v2273_v30 }
  0xab   :  { %1911 = vmatmul.mubr.f32.gmra.mxu1 %v2195_v44  ;;  %1863 = vmatprep.mubr.f32.mxu0 %v2293_v41 }
  0xac   :  { %1913 = vmatprep.mubr.f32.mxu1 %v2218_v2 }
  0xae   :  { %1864 = vmatmul.mubr.f32.gmra.mxu0 %v2301_v0 }
  0xaf   :  { %1914 = vmatmul.mubr.f32.gmra.mxu1 %v2233_v58  ;;  %1866 = vmatprep.mubr.f32.mxu0 %v2316_v40 }
  0xb0   :  { %1916 = vmatprep.mubr.f32.mxu1 %v2260_v26 }
  0xb2   :  { %1867 = vmatmul.mubr.f32.gmra.mxu0 %v2323_v18 }
  0xb3   :  { %1917 = vmatmul.mubr.f32.gmra.mxu1 %v2273_v30  ;;  %1869 = vmatprep.mubr.f32.mxu0 %v2342_v36 }
  0xb4   :  { %1919 = vmatprep.mubr.f32.mxu1 %v2293_v41 }
  0xb6   :  { %1870 = vmatmul.mubr.f32.gmra.mxu0 %v2351_v1 }
  0xb7   :  { %1920 = vmatmul.mubr.f32.gmra.mxu1 %v2301_v0  ;;  %1872 = vmatprep.mubr.f32.mxu0 %v2370_v47 }
  0xb8   :  { %1922 = vmatprep.mubr.f32.mxu1 %v2316_v40 }
  0xba   :  { %1873 = vmatmul.mubr.f32.gmra.mxu0 %v2379_v20 }
  0xbb   :  { %1923 = vmatmul.mubr.f32.gmra.mxu1 %v2323_v18 }
  0xbc   :  { %1925 = vmatprep.mubr.f32.mxu1 %v2342_v36 }
  0xbf   :  { %1926 = vmatmul.mubr.f32.gmra.mxu1 %v2351_v1 }
  0xc0   :  { %1928 = vmatprep.mubr.f32.mxu1 %v2370_v47 }
  0xc3   :  { %1929 = vmatmul.mubr.f32.gmra.mxu1 %v2379_v20 }
  0xff   :  { %v1629_v23 = vpop.f32.mrf.mxu0 }
 0x100   :  { %v180_v16 = vadd.f32 %v1629_v23, %v2692_v11 }
 0x101   :  { %v2599_v26 = vpop.f32.mrf.mxu0 }
 0x105   :  { %v2601_v27 = vpop.f32.mrf.mxu0 }
 0x107   :  { %v2603_v34 = vpop.f32.mrf.mxu0 }
 0x10a   :  { %v2605_v45 = vpop.f32.mrf.mxu0  ;;  %v1685_v48 = vpop.f32.mrf.mxu1 }
 0x10c   :  { %v2607_v56 = vpop.f32.mrf.mxu0  ;;  %v470_v58 = vpop.f32.mrf.mxu1 }
 0x110   :  { %v2609_v61 = vpop.f32.mrf.mxu0  ;;  %v2611_v62 = vpop.f32.mrf.mxu1 }
 0x112   :  { %v2613_v2 = vpop.f32.mrf.mxu0  ;;  %v2615_v12 = vpop.f32.mrf.mxu1 }
 0x116   :  { %v2617_v30 = vpop.f32.mrf.mxu0  ;;  %v2619_v35 = vpop.f32.mrf.mxu1 }
 0x118   :  { %v2621_v44 = vpop.f32.mrf.mxu0  ;;  %v2623_v41 = vpop.f32.mrf.mxu1 }
 0x11c   :  { %v2625_v47 = vpop.f32.mrf.mxu0  ;;  %v2627_v0 = vpop.f32.mrf.mxu1 }
 0x11e   :  { %v2629_v25 = vpop.f32.mrf.mxu0  ;;  %v2631_v15 = vpop.f32.mrf.mxu1 }
 0x122   :  { %v2633_v40 = vpop.f32.mrf.mxu0  ;;  %v2635_v18 = vpop.f32.mrf.mxu1 }
 0x124   :  { %v2637_v31 = vpop.f32.mrf.mxu0  ;;  %v2639_v6 = vpop.f32.mrf.mxu1 }
 0x128   :  { %v2641_v36 = vpop.f32.mrf.mxu0  ;;  %v2643_v49 = vpop.f32.mrf.mxu1 }
 0x12a   :  { %v2645_v1 = vpop.f32.mrf.mxu0  ;;  %v2647_v50 = vpop.f32.mrf.mxu1 }
 0x12b   :  { %2873 = vst [vmem:[#allocation11_spill] sm:$0xff] %v2645_v1 }
 0x12e   :  { %v2649_v14 = vpop.f32.mrf.mxu1  ;;  %v1741_v22 = vpop.f32.mrf.mxu0 }
 0x130   :  { %v2651_v20 = vpop.f32.mrf.mxu1  ;;  %v664_v17 = vpop.f32.mrf.mxu0 }
 0x131   :  { %2874 = vst [vmem:[#allocation24_spill] sm:$0xff] %v2651_v20 }
 0x134   :  { %v2653_v19 = vpop.f32.mrf.mxu1  ;;  %v1744_v8 = vpop.f32.mrf.mxu0 }
 0x135   :  { %2875 = vst [vmem:[#allocation21_spill] sm:$0xff] %v2653_v19 }
 0x136   :  { %v2655_v33 = vpop.f32.mrf.mxu1  ;;  %v678_v29 = vpop.f32.mrf.mxu0 }
 0x137   :  { %2876 = vst [vmem:[#allocation12_spill] sm:$0xff] %v2655_v33  ;;  %v170_v33 = vadd.f32 %v2692_v11, %v2599_v26 }
 0x13a   :  { %v1747_v7 = vpop.f32.mrf.mxu0  ;;  %v1797_v37 = vpop.f32.mrf.mxu1 }
 0x13c   :  { %v2657_v51 = vpop.f32.mrf.mxu0  ;;  %v858_v59 = vpop.f32.mrf.mxu1 }
 0x140   :  { %v2659_v21 = vpop.f32.mrf.mxu0  ;;  %v1800_v38 = vpop.f32.mrf.mxu1 }
 0x142   :  { %v2661_v46 = vpop.f32.mrf.mxu0  ;;  %v874_v43 = vpop.f32.mrf.mxu1 }
 0x146   :  { %v2663_v52 = vpop.f32.mrf.mxu0  ;;  %v1803_v54 = vpop.f32.mrf.mxu1 }
 0x148   :  { %v2665_v13 = vpop.f32.mrf.mxu0  ;;  %v2667_v32 = vpop.f32.mrf.mxu1 }
 0x14c   :  { %v2669_v42 = vpop.f32.mrf.mxu0  ;;  %v2671_v3 = vpop.f32.mrf.mxu1 }
 0x14e   :  { %v2673_v4 = vpop.f32.mrf.mxu0  ;;  %v2675_v57 = vpop.f32.mrf.mxu1 }
 0x14f   :  { %2877 = vst [vmem:[#allocation23_spill] sm:$0xff] %v2673_v4 }
 0x152   :  { %v2677_v60 = vpop.f32.mrf.mxu0  ;;  %v2679_v5 = vpop.f32.mrf.mxu1 }
 0x153   :  { %2878 = vst [vmem:[#allocation13_spill] sm:$0xff] %v2677_v60  ;;  %v471_v60 = vadd.f32 %v470_v58, %v170_v33 }
 0x154   :  { %v2681_v9 = vpop.f32.mrf.mxu0  ;;  %v2683_v28 = vpop.f32.mrf.mxu1 }
 0x155   :  { %2879 = vst [vmem:[#allocation14_spill] sm:$0xff] %v2681_v9  ;;  %v477_v9 = vadd.f32 %v1685_v48, %v180_v16 }
 0x157   :  { %v672_v20 = vadd.f32 %v1741_v22, %v477_v9 }
 0x158   :  { %v2685_v55 = vpop.f32.mrf.mxu0  ;;  %v2687_v10 = vpop.f32.mrf.mxu1 }
 0x159   :  { %2880 = vst [vmem:[#allocation15_spill] sm:$0xff] %v2685_v55  ;;  %2881 = vst [vmem:[#allocation16_spill] sm:$0xff] %v2687_v10  ;;  %v200_v55 = vadd.f32 %v2601_v27, %v2692_v11  ;;  %v665_v10 = vadd.f32 %v664_v17, %v471_v60  ;;  %v867_v4 = vadd.f32 %v1797_v37, %v672_v20 }
 0x15a   :  { %v2694_v39 = vpop.f32.mrf.mxu0  ;;  %v2696_v53 = vpop.f32.mrf.mxu1 }
 0x15b   :  { %2882 = vst [vmem:[#allocation17_spill] sm:$0xff] %v2694_v39  ;;  %2883 = vst [vmem:[#allocation18_spill] sm:$0xff] %v2696_v53  ;;  %v220_v53 = vadd.f32 %v2605_v45, %v2692_v11  ;;  %v489_v26 = vadd.f32 %v2611_v62, %v200_v55  ;;  %v859_v22 = vadd.f32 %v858_v59, %v665_v10 }
 0x15c   :  { %v210_v45 = vadd.f32 %v2692_v11, %v2607_v56 }
 0x15d   :  { %v686_v58 = vadd.f32 %v1744_v8, %v489_v26 }
 0x15e   :  { %v2699_v24 = vpop.f32.mrf.mxu1  ;;  %v1853_v63 = vpop.f32.mrf.mxu0 }
 0x15f   :  { %2884 = vst [vmem:[#allocation19_spill] sm:$0xff] %v2699_v24  ;;  %v190_v24 = vadd.f32 %v2692_v11, %v2603_v34  ;;  %v1104_v33 = vadd.f32 %v1853_v63, %v867_v4  ;;  %v501_v34 = vadd.f32 %v2619_v35, %v220_v53  ;;  %v883_v20 = vadd.f32 %v1800_v38, %v686_v58 }
 0x160   :  { %v2705_v19 = vpop.f32.mrf.mxu1  ;;  %v1097_v1 = vpop.f32.mrf.mxu0  ;;  %v260_v35 = vadd.f32 %v2617_v30, %v2692_v11 }
 0x161   :  { %v483_v16 = vadd.f32 %v2615_v12, %v190_v24  ;;  %v1098_v37 = vadd.f32 %v1097_v1, %v859_v22  ;;  %v495_v12 = vadd.f32 %v2623_v41, %v210_v45  ;;  %v700_v59 = vadd.f32 %v1747_v7, %v501_v34 }
 0x162   :  { %v1856_v39 = vpop.f32.mrf.mxu0 }
 0x163   :  { %v2709_v23 = vpop.f32.mrf.mxu1  ;;  %v679_v17 = vadd.f32 %v678_v29, %v483_v16  ;;  %v1116_v10 = vadd.f32 %v1856_v39, %v883_v20  ;;  %v693_v38 = vadd.f32 %v2657_v51, %v495_v12  ;;  %v899_v53 = vadd.f32 %v1803_v54, %v700_v59 }
 0x164   :  { %2885 = vst [vmem:[#allocation20_spill] sm:$0xff] %v2709_v23  ;;  %v1109_v27 = vpop.f32.mrf.mxu0  ;;  %v240_v23 = vadd.f32 %v2609_v61, %v2692_v11  ;;  %v230_v61 = vadd.f32 %v2692_v11, %v2613_v2  ;;  %v280_v51 = vadd.f32 %v2625_v47, %v2692_v11  ;;  %v525_v54 = vadd.f32 %v2635_v18, %v260_v35 }
 0x165   :  { %v2714_v48 = vpop.f32.mrf.mxu1  ;;  %v875_v4 = vadd.f32 %v874_v43, %v679_v17  ;;  %v891_v2 = vadd.f32 %v2667_v32, %v693_v38  ;;  %v2889_v38 = vld [vmem:[#allocation13_spill] sm:$0xff] }
 0x166   :  { %v1859_v9 = vpop.f32.mrf.mxu0  ;;  %v513_v29 = vadd.f32 %v2627_v0, %v240_v23  ;;  %v507_v39 = vadd.f32 %v2631_v15, %v230_v61  ;;  %v250_v0 = vadd.f32 %v2692_v11, %v2621_v44  ;;  %v728_v45 = vadd.f32 %v2663_v52, %v525_v54  ;;  %v2888_v61 = vld [vmem:[#allocation24_spill] sm:$0xff] }
 0x167   :  { %v1909_v62 = vpop.f32.mrf.mxu1  ;;  %v1110_v41 = vadd.f32 %v1109_v27, %v875_v4  ;;  %v1128_v16 = vadd.f32 %v1859_v9, %v899_v53  ;;  %v2895_v54 = vld [vmem:[#allocation12_spill] sm:$0xff] }
 0x168   :  { %v1281_v60 = vadd.f32 %v1909_v62, %v1104_v33  ;;  %v1121_v55 = vpop.f32.mrf.mxu0  ;;  %v714_v26 = vadd.f32 %v2659_v21, %v513_v29  ;;  %v707_v15 = vadd.f32 %v2661_v46, %v507_v39  ;;  %v519_v33 = vadd.f32 %v2639_v6, %v250_v0  ;;  %v2892_v39 = vld [vmem:[#allocation21_spill] sm:$0xff] }
 0x169   :  { %v1274_v8 = vpop.f32.mrf.mxu1  ;;  %v1122_v21 = vadd.f32 %v1121_v55, %v891_v2  ;;  %v270_v46 = vadd.f32 %v2692_v11, %v2629_v25  ;;  %v537_v62 = vadd.f32 %v2643_v49, %v280_v51  ;;  %v931_v20 = vadd.f32 %v2679_v5, %v728_v45  ;;  %v2893_v2 = vld [vmem:[#allocation14_spill] sm:$0xff]  ;;  %v2897_v45 = vld [vmem:[#allocation17_spill] sm:$0xff] }
 0x16a   :  { %1369 = vst [vmem:[#allocation7 + $0x8] sm:$0xff] %v1281_v60  ;;  %v1275_v24 = vadd.f32 %v1274_v8, %v1098_v37  ;;  %v1862_v56 = vpop.f32.mrf.mxu0  ;;  %v915_v27 = vadd.f32 %v2671_v3, %v714_v26  ;;  %v907_v44 = vadd.f32 %v2675_v57, %v707_v15  ;;  %v300_v3 = vadd.f32 %v2633_v40, %v2692_v11 }
 0x16b   :  { %v1912_v1 = vpop.f32.mrf.mxu1  ;;  %v721_v6 = vadd.f32 %v2665_v13, %v519_v33  ;;  %v531_v60 = vadd.f32 %v2647_v50, %v270_v46  ;;  %v742_v12 = vadd.f32 %v2669_v42, %v537_v62  ;;  %v290_v13 = vadd.f32 %v2692_v11, %v2637_v31  ;;  %v2890_v31 = vld [vmem:[#allocation18_spill] sm:$0xff] }
 0x16c   :  { %1368 = vst [vmem:[#allocation7] sm:$0xff] %v1275_v24  ;;  %v1293_v7 = vadd.f32 %v1912_v1, %v1116_v10  ;;  %v1133_v43 = vpop.f32.mrf.mxu0  ;;  %v1140_v34 = vadd.f32 %v1862_v56, %v915_v27  ;;  %v320_v5 = vadd.f32 %v2641_v36, %v2692_v11  ;;  %v549_v59 = vadd.f32 %v2649_v14, %v300_v3  ;;  %v2886_v10 = vld [vmem:[#allocation23_spill] sm:$0xff]  ;;  %v2887_v24 = vld [vmem:[#allocation16_spill] sm:$0xff] }
 0x16d   :  { %v1286_v63 = vpop.f32.mrf.mxu1  ;;  %v1134_v52 = vadd.f32 %v1133_v43, %v907_v44  ;;  %v923_v25 = vadd.f32 %v2683_v28, %v721_v6  ;;  %v735_v50 = vadd.f32 %v2886_v10, %v531_v60  ;;  %v947_v56 = vadd.f32 %v2887_v24, %v742_v12  ;;  %v2891_v14 = vld [vmem:[#allocation11_spill] sm:$0xff] }
 0x16e   :  { %1371 = vst [vmem:[#allocation7 + $0x18] sm:$0xff] %v1293_v7  ;;  %v1287_v30 = vadd.f32 %v1286_v63, %v1110_v41  ;;  %v1865_v58 = vpop.f32.mrf.mxu0  ;;  %v543_v35 = vadd.f32 %v2888_v61, %v290_v13  ;;  %v756_v53 = vadd.f32 %v2889_v38, %v549_v59  ;;  %v310_v43 = vadd.f32 %v2692_v11, %v2891_v14 }
 0x16f   :  { %v1915_v23 = vpop.f32.mrf.mxu1  ;;  %v1152_v8 = vadd.f32 %v1865_v58, %v931_v20  ;;  %v939_v41 = vadd.f32 %v2890_v31, %v735_v50  ;;  %v561_v63 = vadd.f32 %v2892_v39, %v320_v5 }
 0x170   :  { %1370 = vst [vmem:[#allocation7 + $0x10] sm:$0xff] %v1287_v30  ;;  %v1305_v32 = vadd.f32 %v1915_v23, %v1128_v16  ;;  %v1145_v22 = vpop.f32.mrf.mxu0  ;;  %v749_v16 = vadd.f32 %v2893_v2, %v543_v35  ;;  %v2894_v30 = vld [vmem:[#allocation19_spill] sm:$0xff]  ;;  %v555_v23 = vadd.f32 %v2895_v54, %v310_v43 }
 0x171   :  { %v1298_v9 = vpop.f32.mrf.mxu1  ;;  %v1146_v42 = vadd.f32 %v1145_v22, %v923_v25  ;;  %v963_v58 = vadd.f32 %v2894_v30, %v756_v53 }
 0x172   :  { %1373 = vst [vmem:[#allocation7 + $0x28] sm:$0xff] %v1305_v32  ;;  %v1299_v47 = vadd.f32 %v1298_v9, %v1122_v21  ;;  %v1868_v18 = vpop.f32.mrf.mxu0  ;;  %v2896_v21 = vld [vmem:[#allocation15_spill] sm:$0xff]  ;;  %v955_v22 = vadd.f32 %v2705_v19, %v749_v16  ;;  %v763_v44 = vadd.f32 %v2897_v45, %v555_v23 }
 0x173   :  { %v1918_v17 = vpop.f32.mrf.mxu1  ;;  %v1164_v7 = vadd.f32 %v1868_v18, %v947_v56  ;;  %v770_v32 = vadd.f32 %v2896_v21, %v561_v63 }
 0x174   :  { %1372 = vst [vmem:[#allocation7 + $0x20] sm:$0xff] %v1299_v47  ;;  %v1317_v57 = vadd.f32 %v1918_v17, %v1140_v34  ;;  %v1157_v37 = vpop.f32.mrf.mxu0  ;;  %v2898_v34 = vld [vmem:[#allocation20_spill] sm:$0xff]  ;;  %v971_v17 = vadd.f32 %v2714_v48, %v763_v44 }
 0x175   :  { %v1310_v55 = vpop.f32.mrf.mxu1  ;;  %v1158_v0 = vadd.f32 %v1157_v37, %v939_v41  ;;  %v979_v47 = vadd.f32 %v2898_v34, %v770_v32 }
 0x176   :  { %1375 = vst [vmem:[#allocation7 + $0x38] sm:$0xff] %v1317_v57  ;;  %v1311_v40 = vadd.f32 %v1310_v55, %v1134_v52  ;;  %v1871_v49 = vpop.f32.mrf.mxu0 }
 0x177   :  { %v1921_v4 = vpop.f32.mrf.mxu1  ;;  %v1176_v33 = vadd.f32 %v1871_v49, %v963_v58 }
 0x178   :  { %1374 = vst [vmem:[#allocation7 + $0x30] sm:$0xff] %v1311_v40  ;;  %v1329_v28 = vadd.f32 %v1921_v4, %v1152_v8  ;;  %v1169_v29 = vpop.f32.mrf.mxu0 }
 0x179   :  { %v1322_v1 = vpop.f32.mrf.mxu1  ;;  %v1170_v18 = vadd.f32 %v1169_v29, %v955_v22 }
 0x17a   :  { %1377 = vst [vmem:[#allocation7 + $0x48] sm:$0xff] %v1329_v28  ;;  %v1323_v36 = vadd.f32 %v1322_v1, %v1146_v42  ;;  %v1874_v15 = vpop.f32.mrf.mxu0 }
 0x17b   :  { %v1924_v26 = vpop.f32.mrf.mxu1  ;;  %v1188_v6 = vadd.f32 %v1874_v15, %v979_v47 }
 0x17c   :  { %1376 = vst [vmem:[#allocation7 + $0x40] sm:$0xff] %v1323_v36  ;;  %v1341_v51 = vadd.f32 %v1924_v26, %v1164_v7  ;;  %v1181_v3 = vpop.f32.mrf.mxu0 }
 0x17d   :  { %v1334_v27 = vpop.f32.mrf.mxu1  ;;  %v1182_v19 = vadd.f32 %v1181_v3, %v971_v17 }
 0x17e   :  { %1379 = vst [vmem:[#allocation7 + $0x58] sm:$0xff] %v1341_v51  ;;  %v1335_v11 = vadd.f32 %v1334_v27, %v1158_v0 }
 0x17f   :  { %v1927_v9 = vpop.f32.mrf.mxu1 }
 0x180   :  { %1378 = vst [vmem:[#allocation7 + $0x50] sm:$0xff] %v1335_v11  ;;  %v1353_v46 = vadd.f32 %v1927_v9, %v1176_v33 }
 0x181   :  { %v1346_v62 = vpop.f32.mrf.mxu1 }
 0x182   :  { %1381 = vst [vmem:[#allocation7 + $0x68] sm:$0xff] %v1353_v46  ;;  %v1347_v20 = vadd.f32 %v1346_v62, %v1170_v18 }
 0x183   :  { %v1930_v52 = vpop.f32.mrf.mxu1 }
 0x184   :  { %1380 = vst [vmem:[#allocation7 + $0x60] sm:$0xff] %v1347_v20  ;;  %v1365_v57 = vadd.f32 %v1930_v52, %v1188_v6 }
 0x185   :  { %v1358_v37 = vpop.f32.mrf.mxu1 }
 0x186   :  { %1383 = vst [vmem:[#allocation7 + $0x78] sm:$0xff] %v1365_v57  ;;  %v1359_v60 = vadd.f32 %v1358_v37, %v1182_v19 }
 0x188   :  { %1382 = vst [vmem:[#allocation7 + $0x70] sm:$0xff] %v1359_v60 }
 0x189   :  { %1987 = shalt.err (!%p1984_p0)
}
 0x18a   :  { %1395 = dma.vmem_to_hbm [thread:$0]  %s1390_s24, 2048, %s2782_s3, [#allocation4], %s2003_s15, %s2003_s15, %s2004_s16  }
 0x18b   :  { %2000 = dma.done.wait [#allocation4], 2048  }
 0x18c   :  { %2001 = vsyncadd [#allocation4], 4294965248 }
 0x18d   :  { %1399 = vsyncpa [#allocation3], 1 }
 0x18e   :  { %1400 = vsyncpa [#allocation6], 1 }
 0x18f   :  { %1401 = vsyncpa [#allocation4], 1 }

</bundles_post_ra>
